<compile_context>
chip_gen: v6e
topology: v6e:2x2x1
jax: 0.10.0
libtpu: 0.0.40
codegen_flags: <defaults>
</compile_context>

<pallas_src>
import math

import jax
import jax.numpy as jnp
from jax.experimental import pallas as pl
from jax.experimental.pallas import tpu as pltpu

LATENT_DIM = 32
INPUT_DIM = 2


def _expand_z_kernel(z_ref, out_ref):
    """Broadcast latents over a lane-dense output tile.

    z_ref   : (B, 1, L)      all latents, resident in VMEM (one DMA total)
    out_ref : (Bt, Ht, W*L)  lane-dense output tile for this grid step
    """
    Bt, Ht, WL = out_ref.shape
    L = z_ref.shape[-1]
    W = WL // L
    bi = pl.program_id(0)
    z_tile = z_ref[pl.ds(bi * Bt, Bt), :, :]        # (Bt, 1, L)
    row = jnp.tile(z_tile, (1, 1, W))               # (Bt, 1, W*L)  lane-dense row
    out_ref[...] = jnp.broadcast_to(row, (Bt, Ht, WL))


def _choose_tiles(B, rows, WL, itemsize, target_bytes):
    """Pick (batch_tile, row_tile) so each output block is ~target_bytes.

    Blocks stay large enough to amortize per-grid-step overhead but bounded so
    that the double-buffered output comfortably fits scoped VMEM on v5e/v6e/v7x.
    Row tiles are multiples of 8 (sublane rule) or the full row extent.
    """
    row_bytes = max(1, WL * itemsize)
    batch_bytes = max(1, rows * row_bytes)
    if batch_bytes >= target_bytes and rows % 8 == 0 and rows > 8:
        Ht = max(8, min(rows, (target_bytes // row_bytes) // 8 * 8))
        while rows % Ht != 0:
            Ht -= 8
        return 1, Ht
    Bt = max(1, min(B, target_bytes // batch_bytes))
    while B % Bt != 0:
        Bt -= 1
    return Bt, rows


def expand_z(x, z, *, target_block_bytes=1 << 20):
    """Pallas equivalent of Decoder._expand_z.

    x : [B, *spatial, in_dim] tensor of spatial locations (only shape is used)
    z : [B, L] latent representations
    returns z broadcast to [B, *spatial, L] (same dtype as z).
    """
    B = x.shape[0]
    spatial = tuple(int(s) for s in x.shape[1:-1])
    L = z.shape[-1]

    # Fold spatial dims into (rows, last) and fuse the latent dim into the lane
    # axis: the kernel emits a lane-dense [B, rows, last*L] slab (full-width
    # stores), then we reshape back -- a contiguity-preserving, free reshape.
    if len(spatial) == 0:
        rows, last = 1, 1
    else:
        rows = int(math.prod(spatial[:-1]))
        last = int(spatial[-1])
    WL = last * L

    itemsize = jnp.dtype(z.dtype).itemsize
    Bt, Ht = _choose_tiles(B, rows, WL, itemsize, target_block_bytes)
    grid = (B // Bt, rows // Ht)

    z3 = z.reshape(B, 1, L)

    out3d = pl.pallas_call(
        _expand_z_kernel,
        out_shape=jax.ShapeDtypeStruct((B, rows, WL), z.dtype),
        grid=grid,
        in_specs=[
            # Full z resident in VMEM: constant index map => DMA'd once for the
            # whole grid, no per-step tiny copies.
            pl.BlockSpec((B, 1, L), lambda bi, hi: (0, 0, 0)),
        ],
        out_specs=pl.BlockSpec((Bt, Ht, WL), lambda bi, hi: (bi, hi, 0)),
        compiler_params=pltpu.CompilerParams(
            dimension_semantics=("parallel", "parallel")),
    )(z3)

    return out3d.reshape((B,) + spatial + (L,))


def decoder_forward(x, z):
    """Mirrors Decoder.forward: expand z to x's spatial shape, then decode.

    The base-class `decode` raises NotImplementedError in PyTorch, so there is
    no concrete decode computation to implement; we return (x, expanded_z),
    which is exactly the pair `decode` would receive.
    """
    z_exp = expand_z(x, z)
    # TODO(synk): Decoder.decode is abstract (raises NotImplementedError) in the
    # reference module; subclasses define the actual network, so only the
    # _expand_z hot path is implemented as a Pallas kernel here.
    return x, z_exp


if __name__ == "__main__":
    key = jax.random.PRNGKey(0)
    kx, kz = jax.random.split(key)

    B, H, W = 2, 8, 8
    x = jax.random.normal(kx, (B, H, W, INPUT_DIM), dtype=jnp.float32)
    z = jax.random.normal(kz, (B, LATENT_DIM), dtype=jnp.float32)

    x_out, z_exp = decoder_forward(x, z)
    jax.block_until_ready(z_exp)

    # Reference check against plain-JAX broadcast (same as torch view+expand).
    z_ref = jnp.broadcast_to(z[:, None, None, :], (B, H, W, LATENT_DIM))
    assert z_exp.shape == (B, H, W, LATENT_DIM)
    assert jnp.array_equal(z_exp, z_ref), "expanded z mismatch"
    assert jnp.array_equal(x_out, x), "x passthrough mismatch"

    print("KERNEL_OK")
</pallas_src>

<mosaic_0001>
module attributes {stable_mosaic.version = 11 : i64} {
  func.func @_expand_z_kernel(%arg0: i32, %arg1: i32, %arg2: memref<2x1x32xf32, #tpu.memory_space<vmem>>, %arg3: memref<2x8x256xf32, #tpu.memory_space<vmem>>) attributes {dimension_semantics = [#tpu.dimension_semantics<parallel>, #tpu.dimension_semantics<parallel>], iteration_bounds = array<i64: 1, 1>, scalar_prefetch = 0 : i64, scratch_operands = 0 : i64, tpu.core_type = #tpu.core_type<tc>, window_params = [{pipeline_mode = #tpu.pipeline_mode<synchronous>, transform_indices = @transform_0, window_bounds = array<i64: 2, 1, 32>}, {transform_indices = @transform_1, window_bounds = array<i64: 2, 8, 256>}]} {
    %c2_i32 = arith.constant 2 : i32
    %0 = arith.muli %arg0, %c2_i32 : i32
    %1 = arith.index_cast %0 : i32 to index
    %c0 = arith.constant 0 : index
    %c0_0 = arith.constant 0 : index
    %2 = vector.load %arg2[%1, %c0, %c0_0] : memref<2x1x32xf32, #tpu.memory_space<vmem>>, vector<2x1x32xf32>
    %3 = tpu.concatenate %2, %2, %2, %2, %2, %2, %2, %2 in 2 : vector<2x1x32xf32>, vector<2x1x32xf32>, vector<2x1x32xf32>, vector<2x1x32xf32>, vector<2x1x32xf32>, vector<2x1x32xf32>, vector<2x1x32xf32>, vector<2x1x32xf32> -> vector<2x1x256xf32>
    %4 = vector.shape_cast %3 : vector<2x1x256xf32> to vector<2x1x256xf32>
    %5 = vector.broadcast %4 : vector<2x1x256xf32> to vector<2x8x256xf32>
    %c0_1 = arith.constant 0 : index
    %c0_2 = arith.constant 0 : index
    %c0_3 = arith.constant 0 : index
    %6 = vector.load %arg3[%c0_1, %c0_2, %c0_3] : memref<2x8x256xf32, #tpu.memory_space<vmem>>, vector<2x8x256xf32>
    tpu.vector_store %arg3[%c0_1, %c0_2, %c0_3], %5 {strides = array<i32>} : memref<2x8x256xf32, #tpu.memory_space<vmem>>, vector<2x8x256xf32>,
    return
  }
  func.func @transform_0(%arg0: i32, %arg1: i32) -> (i32, i32, i32) {
    %c0_i32 = arith.constant 0 : i32
    %c0_i32_0 = arith.constant 0 : i32
    %c0_i32_1 = arith.constant 0 : i32
    %c0_i32_2 = arith.constant 0 : i32
    return %c0_i32, %c0_i32_0, %c0_i32_1 : i32, i32, i32
  }
  func.func @transform_1(%arg0: i32, %arg1: i32) -> (i32, i32, i32) {
    %c0_i32 = arith.constant 0 : i32
    %c0_i32_0 = arith.constant 0 : i32
    return %arg0, %arg1, %c0_i32 : i32, i32, i32
  }
}

</mosaic_0001>

<bundles_post_ra>
// kernel: tpu_custom_call.1
= control target key start
LH: loop header
LB: loop body
LE: loop exit
PB: predicated region body
PF: predicated region fallthrough
CT: control target
= control target key end

     0   :  { %6 = vsyncpa [#allocation3], 0  ;;  %s172_s0 = inlined_call_operand.hbm [shape: f32[2,1,32], index: 0, kind: input, shape index: {}]   ;;  %s173_s1 = inlined_call_operand.hbm [shape: f32[2,8,256], index: 1, kind: output, shape index: {}]  }
   0x1   :  { %7 = vsyncpa [#allocation4], 0  ;;  %s145_s6 = smov [#allocation2]  }
   0x2   :  { %s13_s7 = sshll.u32 %s145_s6, 4  ;;  %s14_s7 = int_to_ptr.vmem [resolvable:$true] %s13_s7 }
   0x3   :  { %s109_s8 = scalar_lea.vmem %s14_s7, 32  ;;  %p114_p1 = scmp.lt.s32.totalorder %s14_s7, %s14_s7 }
   0x4   :  { %p110_p0 = scmp.ne.s32.totalorder %s14_s7, %s109_s8  ;;  %p115_p2 = scmp.lt.s32.totalorder %s109_s8, %s109_s8 }
   0x6   :  { %p116_p3 = por %p115_p2, %p114_p1 }
   0x8   :  { %p117_p4 = pnand %p116_p3, %p110_p0 }
   0xa   :  { %120 = shalt.err (!%p117_p4)
}
   0xb   :  { %s146_s9 = smov 16   ;;  %s147_s10 = smov 1  }
   0xc   :  { %19 = dma.hbm_to_vmem [thread:$0]  %s172_s0, 32, %s14_s7, [#allocation3], %s146_s9, %s146_s9, %s147_s10  }
   0xd   :  { %141 = dma.done.wait [#allocation3], 32  }
   0xe   :  { %142 = vsyncadd [#allocation3], 4294967264  ;;  %v29_v0 = vlaneseq  ;;  %v25_v3 = vld [vmem:[#allocation2] sm:$0x1]  ;;  %v26_v4 = vld [vmem:[#allocation2 + $0x1] sm:$0x1] }
   0xf   :  { %s148_s13 = smov 64   ;;  %s149_s14 = smov 32   ;;  %vm55_vm0 = vcmask 261120   ;;  %vm58_vm1 = vcmask 523264   ;;  %vm61_vm2 = vcmask 785408  }
  0x10   :  { %v30_v1 = vshrl.u32 %v29_v0, 7  ;;  %s150_s15 = smov 96   ;;  %s151_s0 = smov [#allocation5]  }
  0x11   :  { %s81_s16 = sshll.u32 %s151_s0, 4  ;;  %s82_s16 = int_to_ptr.vmem [resolvable:$true] %s81_s16 }
  0x12   :  { %v31_v2 = vsub.s32 0, %v30_v1  ;;  %s121_s17 = scalar_lea.vmem %s82_s16, 512  ;;  %p126_p6 = scmp.lt.s32.totalorder %s82_s16, %s82_s16 }
  0x13   :  { %p122_p5 = scmp.ne.s32.totalorder %s82_s16, %s121_s17  ;;  %p127_p7 = scmp.lt.s32.totalorder %s121_s17, %s121_s17 }
  0x14   :  { %v32_v5 = vrot.slane %v25_v3, %v31_v2  ;;  %v36_v6 = vrot.slane %v26_v4, %v31_v2 }
  0x15   :  { %p128_p8 = por %p127_p7, %p126_p6 }
  0x16   :  { %43 = vrot.lane.b32.xlu1 %v32_v5, %s148_s13  ;;  %37 = vrot.lane.b32.xlu0 %v32_v5, %s149_s14 }
  0x17   :  { %p129_p9 = pnand %p128_p8, %p122_p5 }
  0x1a   :  { %45 = vrot.lane.b32.xlu1 %v36_v6, %s148_s13  ;;  %39 = vrot.lane.b32.xlu0 %v36_v6, %s149_s14 }
  0x1e   :  { %51 = vrot.lane.b32.xlu1 %v36_v6, %s150_s15  ;;  %49 = vrot.lane.b32.xlu0 %v32_v5, %s150_s15 }
  0x88   :  { %v44_v7 = vpop.permute.xlu1 %43  ;;  %v38_v8 = vpop.permute.xlu0 %37 }
  0x89   :  { %v56_v11 = vsel %vm55_vm0, %v25_v3, %v38_v8 }
  0x8a   :  { %v59_v15 = vsel %vm58_vm1, %v56_v11, %v44_v7 }
  0x8c   :  { %v46_v9 = vpop.permute.xlu1 %45  ;;  %v40_v10 = vpop.permute.xlu0 %39 }
  0x8d   :  { %v57_v12 = vsel %vm55_vm0, %v26_v4, %v40_v10 }
  0x8e   :  { %v60_v14 = vsel %vm58_vm1, %v57_v12, %v46_v9 }
  0x90   :  { %v52_v13 = vpop.permute.xlu1 %51  ;;  %v50_v16 = vpop.permute.xlu0 %49 }
  0x91   :  { %v63_v17 = vsel %vm61_vm2, %v60_v14, %v52_v13  ;;  %v62_v18 = vsel %vm61_vm2, %v59_v15, %v50_v16 }
  0x92   :  { %v71_v19 = vrot.slane %v63_v17, %v31_v2  ;;  %v67_v20 = vrot.slane %v62_v18, %v31_v2 }
  0x94   :  { %74 = vst [vmem:[#allocation5 + $0x10] sm:$0xff] %v71_v19  ;;  %75 = vst [vmem:[#allocation5 + $0x18] sm:$0xff] %v71_v19 }
  0x95   :  { %72 = vst [vmem:[#allocation5] sm:$0xff] %v67_v20  ;;  %73 = vst [vmem:[#allocation5 + $0x8] sm:$0xff] %v67_v20 }
  0x96   :  { %132 = shalt.err (!%p129_p9)
}
  0x97   :  { %s152_s18 = smov 256  }
  0x98   :  { %87 = dma.vmem_to_hbm [thread:$0]  %s82_s16, 512, %s173_s1, [#allocation4], %s152_s18, %s152_s18, %s146_s9  }
  0x99   :  { %143 = dma.done.wait [#allocation4], 512  }
  0x9a   :  { %144 = vsyncadd [#allocation4], 4294966784 }
  0x9b   :  { %91 = vsyncpa [#allocation3], 1 }
  0x9c   :  { %92 = vsyncpa [#allocation4], 1 }

</bundles_post_ra>
